<compile_context>
chip_gen: v6e
topology: v6e:2x2x1
jax: 0.10.0
libtpu: 0.0.40
codegen_flags: <defaults>
</compile_context>

<pallas_src>
import jax
import jax.numpy as jnp
import numpy as np
from jax.experimental import pallas as pl


def _identity_kernel(x_ref, o_ref):
    # Output is aliased to the input buffer (input_output_aliases={0: 0});
    # the data is already in place, so there is no data movement to do.
    del x_ref, o_ref


def identity_pallas(x):
    """Identity forward pass. Accepts any shape/dtype; returns x unchanged."""
    if x.size == 0:
        return x  # nothing to do; skip the degenerate kernel entirely

    return pl.pallas_call(
        _identity_kernel,
        out_shape=jax.ShapeDtypeStruct(x.shape, x.dtype),
        # Raw HBM refs: no auto-DMA, no VMEM double-buffering, no tiling rules.
        in_specs=[pl.BlockSpec(memory_space=pl.ANY)],
        out_specs=pl.BlockSpec(memory_space=pl.ANY),
        input_output_aliases={0: 0},  # output buffer IS the input buffer
        cost_estimate=pl.CostEstimate(
            flops=0, transcendentals=0, bytes_accessed=0
        ),
    )(x)


if __name__ == "__main__":
    key = jax.random.PRNGKey(0)
    # NCHW input consistent with a conv-style feature map: batch=2, C=4, H=W=16
    x = jax.random.normal(key, (2, 4, 16, 16), dtype=jnp.float32)

    # Retain a host copy for verification: x is donated to the call so the
    # aliased pallas output can reuse its HBM buffer without a defensive copy.
    x_host = np.asarray(jax.device_get(x))

    identity_fn = jax.jit(identity_pallas, donate_argnums=0)
    y = identity_fn(x)
    y = jax.block_until_ready(y)

    assert y.shape == x_host.shape and y.dtype == x_host.dtype
    assert np.array_equal(np.asarray(jax.device_get(y)), x_host)
    print("KERNEL_OK")
</pallas_src>

<mosaic_0001>
module attributes {stable_mosaic.version = 11 : i64} {
  func.func @_identity_kernel(%arg0: memref<2x4x16x16xf32, #tpu.memory_space<any>>, %arg1: memref<2x4x16x16xf32, #tpu.memory_space<any>>) attributes {dimension_semantics = [], scalar_prefetch = 0 : i64, scratch_operands = 0 : i64, tpu.core_type = #tpu.core_type<tc>} {
    return
  }
}

</mosaic_0001>

<bundles_post_ra>
// kernel: identity_pallas.1
= control target key start
LH: loop header
LB: loop body
LE: loop exit
PB: predicated region body
PF: predicated region fallthrough
CT: control target
= control target key end

     0   :  { %s16_s0 = inlined_call_operand.hbm [shape: f32[2,4,16,16], index: 0, kind: input, shape index: {}, may-alias: {0,1}]   ;;  %s17_s1 = inlined_call_operand.hbm [shape: f32[2,4,16,16], index: 1, kind: output, shape index: {}, may-alias: {0,1}]  }

</bundles_post_ra>
